<compile_context>
chip_gen: v6e
topology: v6e:2x2x1
jax: 0.10.0
libtpu: 0.0.40
codegen_flags: <defaults>
</compile_context>

<pallas_src>
import functools

import jax
import jax.numpy as jnp
from jax.experimental import pallas as pl
from jax.experimental.pallas import tpu as pltpu


# ---------------------------------------------------------------------------
# Kernel 1: fully fused whole-n path (small / moderate feature maps).
# ---------------------------------------------------------------------------
def _ea_fused_kernel(x_ref, mk_ref, mv_ref, o_ref):
    """x_ref/o_ref: (Bt, C, n); mk_ref: (S, C); mv_ref: (C, S)."""
    mk = mk_ref[...].astype(jnp.float32)          # (S, C)
    mv = mv_ref[...].astype(jnp.float32)          # (C, S)
    bt = x_ref.shape[0]
    for b in range(bt):                           # static unroll over batch tile
        x = x_ref[b].astype(jnp.float32)          # (C, n)
        # attn^T = mk @ x : (S, n). f32 MXU matmul (K=C tiny; bf16 buys nothing).
        logits = jnp.dot(mk, x, preferred_element_type=jnp.float32)
        # softmax over n (PyTorch Softmax(dim=1)), numerically stable.
        logits = logits - jnp.max(logits, axis=1, keepdims=True)
        e = jnp.exp(logits)
        # reciprocals on the EUP slot; only cheap VPU multiplies remain.
        inv_n = pl.reciprocal(jnp.sum(e, axis=1, keepdims=True), approx=True)
        attn = e * inv_n                                              # (S, n)
        # renormalize over S (PyTorch dim=2), epsilon placement as in reference.
        inv_s = pl.reciprocal(1e-9 + jnp.sum(attn, axis=0, keepdims=True),
                              approx=True)
        attn = attn * inv_s
        # x_attn^T = mv @ attn^T : (C, n).
        x_attn = jnp.dot(mv, attn, preferred_element_type=jnp.float32)
        # residual + ReLU, lane-dense store.
        o_ref[b] = jnp.maximum(x + x_attn, 0.0).astype(o_ref.dtype)


# ---------------------------------------------------------------------------
# Kernel 2: n-tiled two-pass path (large feature maps / v7x VMEM budget).
#   grid = (B, 2, n // tn), iteration order: batch, then pass, then n-tile.
#   pass 0: accumulate online softmax stats (running max / sum of exp over n).
#   pass 1: recompute logits per tile, normalize with the final stats, renorm
#           over S, project with mv, residual + ReLU, write the output tile.
# ---------------------------------------------------------------------------
def _ea_tiled_kernel(x_ref, mk_ref, mv_ref, o_ref, m_sc, l_sc):
    """x_ref/o_ref: (1, C, tn); mk_ref: (S, C); mv_ref: (C, S); m_sc/l_sc: (S, 1)."""
    p = pl.program_id(1)      # 0 = stats pass, 1 = emit pass
    i = pl.program_id(2)      # n-tile index

    x = x_ref[0].astype(jnp.float32)                                 # (C, tn)
    mk = mk_ref[...].astype(jnp.float32)                             # (S, C)
    logits = jnp.dot(mk, x, preferred_element_type=jnp.float32)      # (S, tn)

    @pl.when(jnp.logical_and(p == 0, i == 0))
    def _():
        m_sc[...] = jnp.full_like(m_sc, -jnp.inf)
        l_sc[...] = jnp.zeros_like(l_sc)

    @pl.when(p == 0)
    def _():
        m_prev = m_sc[...]
        m_new = jnp.maximum(m_prev, jnp.max(logits, axis=1, keepdims=True))
        l_sc[...] = (l_sc[...] * jnp.exp(m_prev - m_new)
                     + jnp.sum(jnp.exp(logits - m_new), axis=1, keepdims=True))
        m_sc[...] = m_new

    @pl.when(p == 1)
    def _():
        inv_l = pl.reciprocal(l_sc[...], approx=True)                # (S, 1)
        attn = jnp.exp(logits - m_sc[...]) * inv_l                   # (S, tn)
        inv_s = pl.reciprocal(1e-9 + jnp.sum(attn, axis=0, keepdims=True),
                              approx=True)                           # (1, tn)
        attn = attn * inv_s
        mv = mv_ref[...].astype(jnp.float32)                         # (C, S)
        x_attn = jnp.dot(mv, attn, preferred_element_type=jnp.float32)
        o_ref[0] = jnp.maximum(x + x_attn, 0.0).astype(o_ref.dtype)


# ---------------------------------------------------------------------------
# Wrapper
# ---------------------------------------------------------------------------
def _largest_divisor_at_most(value, cap):
    cap = max(1, min(value, cap))
    for d in range(cap, 0, -1):
        if value % d == 0:
            return d
    return 1


def _pick_n_tile(n, max_tile=4096):
    """Largest multiple of 128 that divides n and is <= max_tile (None if none)."""
    best = None
    t = 128
    while t <= min(n, max_tile):
        if n % t == 0:
            best = t
        t += 128
    return best


@functools.partial(
    jax.jit,
    static_argnames=("n_tile", "core_parallel", "x_buffer_depth", "vmem_limit_bytes"),
)
def external_attention(x, mk, mv, *, n_tile=None, core_parallel=False,
                       x_buffer_depth=None, vmem_limit_bytes=None):
    """ExternalAttention forward. x: (B, C, H, W), mk: (S, C), mv: (C, S).

    core_parallel: set True on v7x (2 TensorCores/chip) to shard the batch axis
        with pltpu.CORE_PARALLEL; plain "parallel" is used otherwise.
    x_buffer_depth: optional pl.Buffered depth for the x input spec (sweep knob
        if an xprof trace still shows exposed DMA).
    vmem_limit_bytes: optional scoped-VMEM raise (mainly v5e's 16 MiB default).
    """
    B, C, H, W = x.shape
    n = H * W
    S = mk.shape[0]
    assert mk.shape == (S, C) and mv.shape == (C, S)

    x2 = x.reshape(B, C, n)
    itemsize = jnp.dtype(x.dtype).itemsize

    # Rough whole-n-path VMEM per batch element: double-buffered in/out blocks
    # at x.dtype plus f32 temporaries (logits/attn/x_attn).
    per_b_vmem = 4 * C * n * itemsize + (2 * C + 4 * S) * n * 4
    vmem_budget = 12 * 1024 * 1024   # stays under every chip's default scoped limit

    auto_tile = _pick_n_tile(n)
    use_tiled = (n_tile is not None) or (per_b_vmem > vmem_budget
                                         and auto_tile is not None)
    # TODO(synk): if per_b_vmem exceeds the budget but 128 does not divide n,
    # we fall back to the whole-n path; pass vmem_limit_bytes (or pad n) there.

    sem_batch = pltpu.CORE_PARALLEL if core_parallel else "parallel"
    x_kwargs = {}
    if x_buffer_depth is not None:
        x_kwargs["pipeline_mode"] = pl.Buffered(x_buffer_depth)
    cp_kwargs = {}
    if vmem_limit_bytes is not None:
        cp_kwargs["vmem_limit_bytes"] = vmem_limit_bytes

    if use_tiled:
        tn = n_tile if n_tile is not None else auto_tile
        if n % tn != 0 or (tn % 128 != 0 and tn != n):
            raise ValueError(f"n_tile={tn} must divide n={n} and be a multiple of 128")
        nt = n // tn
        out = pl.pallas_call(
            _ea_tiled_kernel,
            out_shape=jax.ShapeDtypeStruct((B, C, n), x.dtype),
            grid=(B, 2, nt),
            in_specs=[
                pl.BlockSpec((1, C, tn), lambda b, p, i: (b, 0, i), **x_kwargs),
                pl.BlockSpec((S, C), lambda b, p, i: (0, 0)),   # mk resident
                pl.BlockSpec((C, S), lambda b, p, i: (0, 0)),   # mv resident
            ],
            # Pass 0 parks the output window on tile 0 and never writes it; the
            # correct tile-0 data is written at (p=1, i=0) before any flush, so
            # no garbage reaches HBM and output traffic stays exactly 1x.
            out_specs=pl.BlockSpec((1, C, tn), lambda b, p, i: (b, 0, i * p)),
            scratch_shapes=[
                pltpu.VMEM((S, 1), jnp.float32),   # running max over n
                pltpu.VMEM((S, 1), jnp.float32),   # running sum of exp over n
            ],
            compiler_params=pltpu.CompilerParams(
                dimension_semantics=(sem_batch, "arbitrary", "arbitrary"),
                **cp_kwargs),
        )(x2, mk, mv)
    else:
        # Fold batch elements into each step until the slab is ~2 MiB (or the
        # VMEM budget / batch size caps it) — lifts tiny shapes off the per-step
        # overhead floor.
        per_b_io = C * n * itemsize
        want_bw = max(1, -(-2 * 1024 * 1024 // per_b_io))
        want_vmem = max(1, vmem_budget // max(per_b_vmem, 1))
        bt = _largest_divisor_at_most(B, min(want_bw, want_vmem))
        out = pl.pallas_call(
            _ea_fused_kernel,
            out_shape=jax.ShapeDtypeStruct((B, C, n), x.dtype),
            grid=(B // bt,),
            in_specs=[
                pl.BlockSpec((bt, C, n), lambda g: (g, 0, 0), **x_kwargs),
                pl.BlockSpec((S, C), lambda g: (0, 0)),
                pl.BlockSpec((C, S), lambda g: (0, 0)),
            ],
            out_specs=pl.BlockSpec((bt, C, n), lambda g: (g, 0, 0)),
            compiler_params=pltpu.CompilerParams(
                dimension_semantics=(sem_batch,), **cp_kwargs),
        )(x2, mk, mv)

    return out.reshape(B, C, H, W)


# ---------------------------------------------------------------------------
# Pure-JAX reference (faithful to the PyTorch forward, full f32)
# ---------------------------------------------------------------------------
def external_attention_ref(x, mk, mv):
    B, C, H, W = x.shape
    n = H * W
    q = x.reshape(B, C, n).transpose(0, 2, 1)               # (B, n, C)
    attn = jnp.einsum("bnc,sc->bns", q, mk,
                      precision=jax.lax.Precision.HIGHEST)
    attn = jax.nn.softmax(attn, axis=1)
    attn = attn / (1e-9 + jnp.sum(attn, axis=2, keepdims=True))
    attn = jnp.einsum("bns,cs->bnc", attn, mv,
                      precision=jax.lax.Precision.HIGHEST)
    x_attn = attn.transpose(0, 2, 1).reshape(B, C, H, W)
    return jax.nn.relu(x + x_attn)


# ---------------------------------------------------------------------------
if __name__ == "__main__":
    key = jax.random.PRNGKey(0)
    kx, kmk, kmv = jax.random.split(key, 3)

    B, C, H, W, S = 2, 32, 16, 16, 8
    x = jax.random.normal(kx, (B, C, H, W), jnp.float32)
    mk = jax.random.normal(kmk, (S, C), jnp.float32) * (1.0 / C) ** 0.5
    mv = jax.random.normal(kmv, (C, S), jnp.float32) * (1.0 / S) ** 0.5

    ref = jax.block_until_ready(external_attention_ref(x, mk, mv))

    # Default: whole-n fused path, whole batch folded into one grid step.
    out = jax.block_until_ready(external_attention(x, mk, mv))
    # Also exercise the n-tiled two-pass path (large-feature-map / v7x path).
    out_tiled = jax.block_until_ready(external_attention(x, mk, mv, n_tile=128))

    for o in (out, out_tiled):
        assert o.shape == (B, C, H, W), o.shape
        assert bool(jnp.all(jnp.isfinite(o)))
        # f32 MXU matmuls; only approx EUP reciprocals separate us from the ref.
        assert bool(jnp.allclose(o, ref, rtol=1e-2, atol=1e-2)), \
            float(jnp.max(jnp.abs(o - ref)))
    print("KERNEL_OK")
</pallas_src>

<mosaic_0001>
module attributes {stable_mosaic.version = 11 : i64} {
  func.func @_ea_fused_kernel(%arg0: i32, %arg1: memref<2x32x256xf32, #tpu.memory_space<vmem>>, %arg2: memref<8x32xf32, #tpu.memory_space<vmem>>, %arg3: memref<32x8xf32, #tpu.memory_space<vmem>>, %arg4: memref<2x32x256xf32, #tpu.memory_space<vmem>>) attributes {dimension_semantics = [#tpu.dimension_semantics<parallel>], iteration_bounds = array<i64: 1>, scalar_prefetch = 0 : i64, scratch_operands = 0 : i64, tpu.core_type = #tpu.core_type<tc>, window_params = [{transform_indices = @transform_0, window_bounds = array<i64: 2, 32, 256>}, {pipeline_mode = #tpu.pipeline_mode<synchronous>, transform_indices = @transform_1, window_bounds = array<i64: 8, 32>}, {pipeline_mode = #tpu.pipeline_mode<synchronous>, transform_indices = @transform_2, window_bounds = array<i64: 32, 8>}, {transform_indices = @transform_3, window_bounds = array<i64: 2, 32, 256>}]} {
    %c0 = arith.constant 0 : index
    %c0_0 = arith.constant 0 : index
    %0 = vector.load %arg2[%c0, %c0_0] : memref<8x32xf32, #tpu.memory_space<vmem>>, vector<8x32xf32>
    %c0_1 = arith.constant 0 : index
    %c0_2 = arith.constant 0 : index
    %1 = vector.load %arg3[%c0_1, %c0_2] : memref<32x8xf32, #tpu.memory_space<vmem>>, vector<32x8xf32>
    %c0_3 = arith.constant 0 : index
    %c0_4 = arith.constant 0 : index
    %c0_5 = arith.constant 0 : index
    %2 = vector.load %arg1[%c0_3, %c0_4, %c0_5] : memref<2x32x256xf32, #tpu.memory_space<vmem>>, vector<1x32x256xf32>
    %3 = vector.shape_cast %2 : vector<1x32x256xf32> to vector<32x256xf32>
    %cst = arith.constant dense<0.000000e+00> : vector<8x256xf32>
    %4 = tpu.matmul %0, %3, %cst {dimension_numbers = #tpu.dot_dimension_numbers<[1], [0], [0], [1], [0, 0, 1, 1], [], []>} : vector<8x32xf32>, vector<32x256xf32>, vector<8x256xf32> -> vector<8x256xf32>
    %cst_6 = arith.constant dense<0xFF800000> : vector<8xf32>
    %5 = vector.multi_reduction <maximumf>, %4, %cst_6 [1] : vector<8x256xf32> to vector<8xf32>
    %6 = vector.shape_cast %5 : vector<8xf32> to vector<8x1xf32>
    %7 = vector.broadcast %6 : vector<8x1xf32> to vector<8x256xf32>
    %8 = arith.subf %4, %7 : vector<8x256xf32>
    %9 = math.exp %8 : vector<8x256xf32>
    %cst_7 = arith.constant dense<0.000000e+00> : vector<8xf32>
    %10 = vector.multi_reduction <add>, %9, %cst_7 [1] : vector<8x256xf32> to vector<8xf32>
    %11 = vector.shape_cast %10 : vector<8xf32> to vector<8x1xf32>
    %12 = tpu.reciprocal %11 {approx = true} : vector<8x1xf32> -> vector<8x1xf32>
    %13 = vector.broadcast %12 : vector<8x1xf32> to vector<8x256xf32>
    %14 = arith.mulf %9, %13 : vector<8x256xf32>
    %cst_8 = arith.constant dense<0.000000e+00> : vector<256xf32>
    %15 = vector.multi_reduction <add>, %14, %cst_8 [0] : vector<8x256xf32> to vector<256xf32>
    %16 = vector.shape_cast %15 : vector<256xf32> to vector<1x256xf32>
    %cst_9 = arith.constant 9.99999971E-10 : f32
    %17 = vector.broadcast %cst_9 : f32 to vector<1x256xf32>
    %18 = arith.addf %17, %16 : vector<1x256xf32>
    %19 = tpu.reciprocal %18 {approx = true} : vector<1x256xf32> -> vector<1x256xf32>
    %20 = vector.broadcast %19 : vector<1x256xf32> to vector<8x256xf32>
    %21 = arith.mulf %14, %20 : vector<8x256xf32>
    %cst_10 = arith.constant dense<0.000000e+00> : vector<32x256xf32>
    %22 = tpu.matmul %1, %21, %cst_10 {dimension_numbers = #tpu.dot_dimension_numbers<[1], [0], [0], [1], [0, 0, 1, 1], [], []>} : vector<32x8xf32>, vector<8x256xf32>, vector<32x256xf32> -> vector<32x256xf32>
    %23 = arith.addf %3, %22 : vector<32x256xf32>
    %cst_11 = arith.constant 0.000000e+00 : f32
    %24 = vector.broadcast %cst_11 : f32 to vector<32x256xf32>
    %25 = arith.maximumf %23, %24 : vector<32x256xf32>
    %c0_12 = arith.constant 0 : index
    %c0_13 = arith.constant 0 : index
    %c0_14 = arith.constant 0 : index
    %26 = vector.load %arg4[%c0_12, %c0_13, %c0_14] : memref<2x32x256xf32, #tpu.memory_space<vmem>>, vector<1x32x256xf32>
    %27 = vector.shape_cast %26 : vector<1x32x256xf32> to vector<32x256xf32>
    %28 = vector.shape_cast %25 : vector<32x256xf32> to vector<1x32x256xf32>
    tpu.vector_store %arg4[%c0_12, %c0_13, %c0_14], %28 {strides = array<i32>} : memref<2x32x256xf32, #tpu.memory_space<vmem>>, vector<1x32x256xf32>,
    %c1 = arith.constant 1 : index
    %c0_15 = arith.constant 0 : index
    %c0_16 = arith.constant 0 : index
    %29 = vector.load %arg1[%c1, %c0_15, %c0_16] : memref<2x32x256xf32, #tpu.memory_space<vmem>>, vector<1x32x256xf32>
    %30 = vector.shape_cast %29 : vector<1x32x256xf32> to vector<32x256xf32>
    %cst_17 = arith.constant dense<0.000000e+00> : vector<8x256xf32>
    %31 = tpu.matmul %0, %30, %cst_17 {dimension_numbers = #tpu.dot_dimension_numbers<[1], [0], [0], [1], [0, 0, 1, 1], [], []>} : vector<8x32xf32>, vector<32x256xf32>, vector<8x256xf32> -> vector<8x256xf32>
    %cst_18 = arith.constant dense<0xFF800000> : vector<8xf32>
    %32 = vector.multi_reduction <maximumf>, %31, %cst_18 [1] : vector<8x256xf32> to vector<8xf32>
    %33 = vector.shape_cast %32 : vector<8xf32> to vector<8x1xf32>
    %34 = vector.broadcast %33 : vector<8x1xf32> to vector<8x256xf32>
    %35 = arith.subf %31, %34 : vector<8x256xf32>
    %36 = math.exp %35 : vector<8x256xf32>
    %cst_19 = arith.constant dense<0.000000e+00> : vector<8xf32>
    %37 = vector.multi_reduction <add>, %36, %cst_19 [1] : vector<8x256xf32> to vector<8xf32>
    %38 = vector.shape_cast %37 : vector<8xf32> to vector<8x1xf32>
    %39 = tpu.reciprocal %38 {approx = true} : vector<8x1xf32> -> vector<8x1xf32>
    %40 = vector.broadcast %39 : vector<8x1xf32> to vector<8x256xf32>
    %41 = arith.mulf %36, %40 : vector<8x256xf32>
    %cst_20 = arith.constant dense<0.000000e+00> : vector<256xf32>
    %42 = vector.multi_reduction <add>, %41, %cst_20 [0] : vector<8x256xf32> to vector<256xf32>
    %43 = vector.shape_cast %42 : vector<256xf32> to vector<1x256xf32>
    %cst_21 = arith.constant 9.99999971E-10 : f32
    %44 = vector.broadcast %cst_21 : f32 to vector<1x256xf32>
    %45 = arith.addf %44, %43 : vector<1x256xf32>
    %46 = tpu.reciprocal %45 {approx = true} : vector<1x256xf32> -> vector<1x256xf32>
    %47 = vector.broadcast %46 : vector<1x256xf32> to vector<8x256xf32>
    %48 = arith.mulf %41, %47 : vector<8x256xf32>
    %cst_22 = arith.constant dense<0.000000e+00> : vector<32x256xf32>
    %49 = tpu.matmul %1, %48, %cst_22 {dimension_numbers = #tpu.dot_dimension_numbers<[1], [0], [0], [1], [0, 0, 1, 1], [], []>} : vector<32x8xf32>, vector<8x256xf32>, vector<32x256xf32> -> vector<32x256xf32>
    %50 = arith.addf %30, %49 : vector<32x256xf32>
    %cst_23 = arith.constant 0.000000e+00 : f32
    %51 = vector.broadcast %cst_23 : f32 to vector<32x256xf32>
    %52 = arith.maximumf %50, %51 : vector<32x256xf32>
    %c1_24 = arith.constant 1 : index
    %c0_25 = arith.constant 0 : index
    %c0_26 = arith.constant 0 : index
    %53 = vector.load %arg4[%c1_24, %c0_25, %c0_26] : memref<2x32x256xf32, #tpu.memory_space<vmem>>, vector<1x32x256xf32>
    %54 = vector.shape_cast %53 : vector<1x32x256xf32> to vector<32x256xf32>
    %55 = vector.shape_cast %52 : vector<32x256xf32> to vector<1x32x256xf32>
    tpu.vector_store %arg4[%c1_24, %c0_25, %c0_26], %55 {strides = array<i32>} : memref<2x32x256xf32, #tpu.memory_space<vmem>>, vector<1x32x256xf32>,
    return
  }
  func.func @transform_0(%arg0: i32) -> (i32, i32, i32) {
    %c0_i32 = arith.constant 0 : i32
    %c0_i32_0 = arith.constant 0 : i32
    %c0_i32_1 = arith.constant 0 : i32
    return %arg0, %c0_i32, %c0_i32_0 : i32, i32, i32
  }
  func.func @transform_1(%arg0: i32) -> (i32, i32) {
    %c0_i32 = arith.constant 0 : i32
    %c0_i32_0 = arith.constant 0 : i32
    %c0_i32_1 = arith.constant 0 : i32
    return %c0_i32, %c0_i32_0 : i32, i32
  }
  func.func @transform_2(%arg0: i32) -> (i32, i32) {
    %c0_i32 = arith.constant 0 : i32
    %c0_i32_0 = arith.constant 0 : i32
    %c0_i32_1 = arith.constant 0 : i32
    return %c0_i32, %c0_i32_0 : i32, i32
  }
  func.func @transform_3(%arg0: i32) -> (i32, i32, i32) {
    %c0_i32 = arith.constant 0 : i32
    %c0_i32_0 = arith.constant 0 : i32
    %c0_i32_1 = arith.constant 0 : i32
    return %arg0, %c0_i32, %c0_i32_0 : i32, i32, i32
  }
}

</mosaic_0001>

<bundles_post_ra>
// kernel: external_attention.1
= control target key start
LH: loop header
LB: loop body
LE: loop exit
PB: predicated region body
PF: predicated region fallthrough
CT: control target
= control target key end

     0   :  { %v541_v3 = vmov 0.0   ;;  %vm27_vm0 = vcmask 261120   ;;  %vm135_vm1 = vcmask 64512   ;;  %s769_s0 = inlined_call_operand.vmem [shape: f32[2,32,256], index: 0, kind: input, shape index: {}]   ;;  %s770_s1 = inlined_call_operand.vmem [shape: f32[8,32], index: 1, kind: input, shape index: {}]   ;;  %s771_s2 = inlined_call_operand.vmem [shape: f32[32,8], index: 2, kind: input, shape index: {}]   ;;  %s772_s3 = inlined_call_operand.vmem [shape: f32[2,32,256], index: 3, kind: output, shape index: {}]  }
   0x1   :  { %v565_v0 = vld [vmem:[%s769_s0 + $0x38] sm:$0xff]  ;;  %v570_v1 = vld [vmem:[%s769_s0 + $0x30] sm:$0xff]  ;;  %v575_v2 = vld [vmem:[%s769_s0 + $0x28] sm:$0xff]  ;;  %95 = vmatprep.mubr.f32.mxu0 %v541_v3  ;;  %224 = vmatprep.mubr.f32.mxu1 %v541_v3 }
   0x2   :  { %55 = vmatprep.subr.mxu0 %v565_v0  ;;  %v583_v4 = vld [vmem:[%s769_s0 + $0x20] sm:$0xff]  ;;  %v589_v5 = vld [vmem:[%s769_s0 + $0x18] sm:$0xff]  ;;  %v595_v6 = vld [vmem:[%s769_s0 + $0x10] sm:$0xff] }
   0x3   :  { %56 = vmatpush1.msra.mxu0 %v570_v1  ;;  %v601_v7 = vld [vmem:[%s769_s0 + $0x8] sm:$0xff]  ;;  %v607_v8 = vld [vmem:[%s769_s0] sm:$0xff]  ;;  %v628_v44 = vld [vmem:[%s769_s0 + $0x78] sm:$0xff] }
   0x4   :  { %57 = vmatprep.subr.mxu0 %v575_v2  ;;  %v613_v9 = vld [vmem:[%s770_s1] sm:$0xff]  ;;  %v633_v45 = vld [vmem:[%s769_s0 + $0x70] sm:$0xff]  ;;  %v638_v46 = vld [vmem:[%s769_s0 + $0x68] sm:$0xff] }
   0x5   :  { %58 = vmatpush1.msra.mxu0 %v583_v4  ;;  %v623_v43 = vld [vmem:[%s771_s2] sm:$0xff]  ;;  %v653_v48 = vld [vmem:[%s771_s2 + $0x8] sm:$0xff]  ;;  %v658_v49 = vld [vmem:[%s769_s0 + $0x58] sm:$0xff] }
   0x6   :  { %59 = vmatprep.subr.mxu0 %v589_v5  ;;  %v646_v47 = vld [vmem:[%s769_s0 + $0x60] sm:$0xff]  ;;  %v664_v50 = vld [vmem:[%s769_s0 + $0x50] sm:$0xff]  ;;  %v670_v51 = vld [vmem:[%s769_s0 + $0x48] sm:$0xff] }
   0x7   :  { %60 = vmatpush1.msra.mxu0 %v595_v6  ;;  %v678_v52 = vld [vmem:[%s769_s0 + $0x40] sm:$0xff] }
   0x8   :  { %61 = vmatprep.subr.mxu0 %v601_v7 }
   0x9   :  { %62 = vmatpush1.msra.mxu0 %v607_v8 }
   0xa   :  { %492 = vmatmul.mubr.msk.f32.vlgmr.msra.gmra.mxu0 %vm27_vm0, %v613_v9 }
   0xb   :  { %212 = vmatprep.mubr.f32.mxu0 %v541_v3 }
  0xca   :  { %v97_v10 = vpop.f32.mrf.mxu0 }
  0xcc   :  { %v99_v11 = vpop.f32.mrf.mxu0 }
  0xcd   :  { %v102_v12 = vmax.f32 %v97_v10, %v99_v11 }
  0xcf   :  { %103 = vmax.xlane.f32.xlu0 %v102_v12 }
 0x158   :  { %v104_v13 = vpop.xlane.xlu0 %103 }
 0x159   :  { %v105_v14 = vsub.f32 %v97_v10, %v104_v13  ;;  %v106_v15 = vsub.f32 %v99_v11, %v104_v13 }
 0x15b   :  { %v107_v16 = vmul.f32 1.442695, %v105_v14  ;;  %v109_v17 = vmul.f32 1.442695, %v106_v15 }
 0x15d   :  { %521 = vpow2.f32 %v107_v16 }
 0x15e   :  { %523 = vpow2.f32 %v109_v17  ;;  %v17_v17 = vld [vmem:[%s771_s2 + $0x10] sm:$0xff] }
 0x16a   :  { %v522_v18 = vpop.eup %521 }
 0x16b   :  { %v524_v19 = vpop.eup %523 }
 0x16c   :  { %v111_v20 = vadd.f32 %v524_v19, %v522_v18 }
 0x16e   :  { %112 = vadd.xlane.f32.xlu0 %v111_v20 }
 0x1f7   :  { %v113_v21 = vpop.xlane.xlu0 %112 }
 0x1f8   :  { %525 = vrcp.f32 %v113_v21 }
 0x205   :  { %v526_v22 = vpop.eup %525 }
 0x206   :  { %v116_v23 = vmul.f32 %v526_v22, %v524_v19  ;;  %v115_v24 = vmul.f32 %v526_v22, %v522_v18  ;;  %v18_v18 = vld [vmem:[%s771_s2 + $0x18] sm:$0xff] }
 0x208   :  { %v123_v25 = vrot.slane %v116_v23, 4  ;;  %v117_v26 = vrot.slane %v115_v24, 4 }
 0x20a   :  { %v124_v27 = vadd.f32 %v123_v25, %v116_v23  ;;  %v118_v28 = vadd.f32 %v117_v26, %v115_v24 }
 0x20c   :  { %v125_v29 = vrot.slane %v124_v27, 2  ;;  %v119_v30 = vrot.slane %v118_v28, 2 }
 0x20e   :  { %v126_v31 = vadd.f32 %v125_v29, %v124_v27  ;;  %v120_v32 = vadd.f32 %v119_v30, %v118_v28 }
 0x210   :  { %v127_v33 = vrot.slane %v126_v31, 1  ;;  %v121_v34 = vrot.slane %v120_v32, 1 }
 0x212   :  { %v128_v35 = vadd.f32 %v127_v33, %v126_v31  ;;  %v122_v36 = vadd.f32 %v121_v34, %v120_v32 }
 0x214   :  { %v130_v37 = vadd.f32 1e-09, %v128_v35  ;;  %v129_v38 = vadd.f32 1e-09, %v122_v36 }
 0x216   :  { %527 = vrcp.f32 %v130_v37 }
 0x217   :  { %529 = vrcp.f32 %v129_v38 }
 0x223   :  { %v528_v39 = vpop.eup %527 }
 0x224   :  { %v530_v40 = vpop.eup %529  ;;  %v134_v41 = vmul.f32 %v528_v39, %v116_v23 }
 0x225   :  { %v133_v42 = vmul.f32 %v530_v40, %v115_v24 }
 0x226   :  { %178 = vmatprep.subr.mxu0 %v134_v41  ;;  %518 = vmatprep.subr.mxu1 %v134_v41 }
 0x227   :  { %179 = vmatpush1.msra.mxu0 %v133_v42  ;;  %519 = vmatpush1.msra.mxu1 %v133_v42 }
 0x228   :  { %493 = vmatmul.mubr.msk.f32.vlgmr.msra.gmra.mxu0 %vm135_vm1, %v623_v43  ;;  %294 = vmatprep.subr.mxu0 %v628_v44 }
 0x229   :  { %295 = vmatpush1.msra.mxu0 %v633_v45  ;;  %218 = vmatprep.mubr.f32.mxu0 %v541_v3 }
 0x22a   :  { %296 = vmatprep.subr.mxu0 %v638_v46  ;;  %495 = vmatmul.mubr.msk.f32.vlgmr.msra.gmra.mxu1 %vm135_vm1, %v17_v17 }
 0x22b   :  { %297 = vmatpush1.msra.mxu0 %v646_v47  ;;  %230 = vmatprep.mubr.f32.mxu1 %v541_v3 }
 0x22c   :  { %494 = vmatmul.mubr.msk.f32.gmra.mxu0 %vm135_vm1, %v653_v48  ;;  %298 = vmatprep.subr.mxu0 %v658_v49 }
 0x22d   :  { %299 = vmatpush1.msra.mxu0 %v664_v50  ;;  %334 = vmatprep.mubr.f32.mxu0 %v541_v3 }
 0x22e   :  { %300 = vmatprep.subr.mxu0 %v670_v51  ;;  %496 = vmatmul.mubr.msk.f32.gmra.mxu1 %vm135_vm1, %v18_v18 }
 0x22f   :  { %301 = vmatpush1.msra.mxu0 %v678_v52  ;;  %438 = vmatprep.mubr.f32.mxu1 %v541_v3 }
 0x230   :  { %505 = vmatmul.mubr.msk.f32.vlgmr.msra.gmra.mxu0 %vm27_vm0, %v613_v9 }
 0x2e8   :  { %v214_v53 = vpop.f32.mrf.mxu0 }
 0x2e9   :  { %v237_v54 = vadd.f32 %v214_v53, %v607_v8 }
 0x2ea   :  { %v216_v55 = vpop.f32.mrf.mxu0  ;;  %v226_v41 = vpop.f32.mrf.mxu1 }
 0x2eb   :  { %v245_v56 = vmax.f32 %v237_v54, 0.0  ;;  %v238_v57 = vadd.f32 %v216_v55, %v601_v7  ;;  %v241_v42 = vadd.f32 %v226_v41, %v583_v4 }
 0x2ec   :  { %v220_v58 = vpop.f32.mrf.mxu0  ;;  %v228_v53 = vpop.f32.mrf.mxu1 }
 0x2ed   :  { %253 = vst [vmem:[%s772_s3] sm:$0xff] %v245_v56  ;;  %v246_v59 = vmax.f32 %v238_v57, 0.0  ;;  %v239_v60 = vadd.f32 %v220_v58, %v595_v6  ;;  %v249_v54 = vmax.f32 %v241_v42, 0.0 }
 0x2ee   :  { %v222_v61 = vpop.f32.mrf.mxu0  ;;  %v232_v55 = vpop.f32.mrf.mxu1 }
 0x2ef   :  { %254 = vst [vmem:[%s772_s3 + $0x8] sm:$0xff] %v246_v59  ;;  %v247_v62 = vmax.f32 %v239_v60, 0.0  ;;  %v240_v63 = vadd.f32 %v222_v61, %v589_v5  ;;  %257 = vst [vmem:[%s772_s3 + $0x20] sm:$0xff] %v249_v54 }
 0x2f0   :  { %v336_v8 = vpop.f32.mrf.mxu0  ;;  %v234_v56 = vpop.f32.mrf.mxu1 }
 0x2f1   :  { %255 = vst [vmem:[%s772_s3 + $0x10] sm:$0xff] %v247_v62  ;;  %v248_v7 = vmax.f32 %v240_v63, 0.0  ;;  %v244_v4 = vadd.f32 %v234_v56, %v565_v0 }
 0x2f2   :  { %v338_v9 = vpop.f32.mrf.mxu0 }
 0x2f3   :  { %256 = vst [vmem:[%s772_s3 + $0x18] sm:$0xff] %v248_v7  ;;  %v341_v6 = vmax.f32 %v336_v8, %v338_v9 }
 0x2f5   :  { %342 = vmax.xlane.f32.xlu1 %v341_v6 }
 0x37e   :  { %v343_v10 = vpop.xlane.xlu1 %342 }
 0x37f   :  { %v344_v11 = vsub.f32 %v336_v8, %v343_v10  ;;  %v345_v12 = vsub.f32 %v338_v9, %v343_v10 }
 0x381   :  { %v346_v13 = vmul.f32 1.442695, %v344_v11  ;;  %v348_v14 = vmul.f32 1.442695, %v345_v12 }
 0x383   :  { %531 = vpow2.f32 %v346_v13 }
 0x384   :  { %533 = vpow2.f32 %v348_v14 }
 0x390   :  { %v532_v5 = vpop.eup %531 }
 0x391   :  { %v534_v15 = vpop.eup %533 }
 0x392   :  { %v350_v16 = vadd.f32 %v534_v15, %v532_v5 }
 0x394   :  { %351 = vadd.xlane.f32.xlu1 %v350_v16 }
 0x41d   :  { %v352_v19 = vpop.xlane.xlu1 %351 }
 0x41e   :  { %535 = vrcp.f32 %v352_v19 }
 0x42b   :  { %v536_v20 = vpop.eup %535 }
 0x42c   :  { %v355_v21 = vmul.f32 %v536_v20, %v534_v15  ;;  %v354_v22 = vmul.f32 %v536_v20, %v532_v5 }
 0x42e   :  { %v362_v23 = vrot.slane %v355_v21, 4  ;;  %v356_v24 = vrot.slane %v354_v22, 4 }
 0x430   :  { %v363_v25 = vadd.f32 %v362_v23, %v355_v21  ;;  %v357_v26 = vadd.f32 %v356_v24, %v354_v22 }
 0x432   :  { %v364_v27 = vrot.slane %v363_v25, 2  ;;  %v358_v28 = vrot.slane %v357_v26, 2 }
 0x434   :  { %v365_v29 = vadd.f32 %v364_v27, %v363_v25  ;;  %v359_v30 = vadd.f32 %v358_v28, %v357_v26 }
 0x436   :  { %v366_v31 = vrot.slane %v365_v29, 1  ;;  %v360_v32 = vrot.slane %v359_v30, 1 }
 0x438   :  { %v367_v33 = vadd.f32 %v366_v31, %v365_v29  ;;  %v361_v34 = vadd.f32 %v360_v32, %v359_v30 }
 0x43a   :  { %v369_v35 = vadd.f32 1e-09, %v367_v33  ;;  %v368_v36 = vadd.f32 1e-09, %v361_v34 }
 0x43c   :  { %537 = vrcp.f32 %v369_v35 }
 0x43d   :  { %539 = vrcp.f32 %v368_v36 }
 0x449   :  { %v538_v37 = vpop.eup %537 }
 0x44a   :  { %v540_v38 = vpop.eup %539  ;;  %v373_v39 = vmul.f32 %v538_v37, %v355_v21 }
 0x44b   :  { %v372_v40 = vmul.f32 %v540_v38, %v354_v22 }
 0x44c   :  { %404 = vmatprep.subr.mxu1 %v373_v39 }
 0x44d   :  { %405 = vmatpush1.msra.mxu1 %v372_v40 }
 0x44e   :  { %506 = vmatmul.mubr.msk.f32.vlgmr.msra.gmra.mxu1 %vm135_vm1, %v623_v43  ;;  %v242_v43 = vadd.f32 %v228_v53, %v575_v2  ;;  %v252_v2 = vmax.f32 %v244_v4, 0.0 }
 0x44f   :  { %444 = vmatprep.mubr.f32.mxu1 %v541_v3 }
 0x450   :  { %260 = vst [vmem:[%s772_s3 + $0x38] sm:$0xff] %v252_v2 }
 0x452   :  { %507 = vmatmul.mubr.msk.f32.gmra.mxu1 %vm135_vm1, %v653_v48  ;;  %v250_v48 = vmax.f32 %v242_v43, 0.0 }
 0x453   :  { %450 = vmatprep.mubr.f32.mxu1 %v541_v3 }
 0x454   :  { %258 = vst [vmem:[%s772_s3 + $0x28] sm:$0xff] %v250_v48 }
 0x456   :  { %508 = vmatmul.mubr.msk.f32.gmra.mxu1 %vm135_vm1, %v17_v17 }
 0x457   :  { %456 = vmatprep.mubr.f32.mxu1 %v541_v3  ;;  %v243_v3 = vadd.f32 %v232_v55, %v570_v1 }
 0x459   :  { %v251_v57 = vmax.f32 %v243_v3, 0.0 }
 0x45a   :  { %509 = vmatmul.mubr.msk.f32.gmra.mxu1 %vm135_vm1, %v18_v18 }
 0x45b   :  { %259 = vst [vmem:[%s772_s3 + $0x30] sm:$0xff] %v251_v57 }
 0x50e   :  { %v440_v58 = vpop.f32.mrf.mxu1 }
 0x50f   :  { %v463_v59 = vadd.f32 %v678_v52, %v440_v58 }
 0x510   :  { %v442_v60 = vpop.f32.mrf.mxu1 }
 0x511   :  { %v471_v61 = vmax.f32 %v463_v59, 0.0  ;;  %v464_v1 = vadd.f32 %v670_v51, %v442_v60 }
 0x512   :  { %v446_v62 = vpop.f32.mrf.mxu1 }
 0x513   :  { %510 = vst [vmem:[%s772_s3 + $0x40] sm:$0xff] %v471_v61  ;;  %v472_v0 = vmax.f32 %v464_v1, 0.0  ;;  %v465_v63 = vadd.f32 %v664_v50, %v446_v62 }
 0x514   :  { %v448_v8 = vpop.f32.mrf.mxu1 }
 0x515   :  { %511 = vst [vmem:[%s772_s3 + $0x48] sm:$0xff] %v472_v0  ;;  %v473_v7 = vmax.f32 %v465_v63, 0.0  ;;  %v466_v52 = vadd.f32 %v658_v49, %v448_v8 }
 0x516   :  { %v452_v9 = vpop.f32.mrf.mxu1 }
 0x517   :  { %512 = vst [vmem:[%s772_s3 + $0x50] sm:$0xff] %v473_v7  ;;  %v474_v51 = vmax.f32 %v466_v52, 0.0  ;;  %v467_v6 = vadd.f32 %v646_v47, %v452_v9 }
 0x518   :  { %v454_v10 = vpop.f32.mrf.mxu1 }
 0x519   :  { %513 = vst [vmem:[%s772_s3 + $0x58] sm:$0xff] %v474_v51  ;;  %v475_v50 = vmax.f32 %v467_v6, 0.0  ;;  %v468_v11 = vadd.f32 %v638_v46, %v454_v10 }
 0x51a   :  { %v458_v12 = vpop.f32.mrf.mxu1 }
 0x51b   :  { %514 = vst [vmem:[%s772_s3 + $0x60] sm:$0xff] %v475_v50  ;;  %v476_v49 = vmax.f32 %v468_v11, 0.0  ;;  %v469_v13 = vadd.f32 %v633_v45, %v458_v12 }
 0x51c   :  { %v460_v14 = vpop.f32.mrf.mxu1 }
 0x51d   :  { %515 = vst [vmem:[%s772_s3 + $0x68] sm:$0xff] %v476_v49  ;;  %v477_v47 = vmax.f32 %v469_v13, 0.0  ;;  %v470_v5 = vadd.f32 %v628_v44, %v460_v14 }
 0x51f   :  { %516 = vst [vmem:[%s772_s3 + $0x70] sm:$0xff] %v477_v47  ;;  %v478_v46 = vmax.f32 %v470_v5, 0.0 }
 0x521   :  { %517 = vst [vmem:[%s772_s3 + $0x78] sm:$0xff] %v478_v46 }

</bundles_post_ra>
